<compile_context>
chip_gen: v7x
topology: tpu7x:2x2x1
jax: 0.10.0
libtpu: 0.0.40
codegen_flags: <defaults>
</compile_context>

<pallas_src>
import jax
import jax.numpy as jnp
from jax import lax
from jax.experimental import pallas as pl
from jax.experimental.pallas import tpu as pltpu


def _round_up(x, m):
    return (x + m - 1) // m * m


def _make_bce_kernel(binary_targets):
    def kernel(pred_ref, gt_ref, rows_ref, cols_ref, scale_ref, out_ref):
        p = pred_ref[...].astype(jnp.float32)
        g = gt_ref[...].astype(jnp.float32)
        gb, mp, np_ = p.shape  # static

        # Rebuild (crop + padding mask + 1/(m+n) scale) from per-graph
        # scalars — replaces a full f32 mask slab streamed from HBM.
        row = lax.broadcasted_iota(jnp.int32, (gb, mp, np_), 1)
        col = lax.broadcasted_iota(jnp.int32, (gb, mp, np_), 2)
        valid = (row < rows_ref[...]) & (col < cols_ref[...])
        wm = jnp.where(valid, scale_ref[...], 0.0)

        if binary_targets:
            # gt strictly {0,1} -> one transcendental per element.
            sel = jnp.where(g > 0.5, p, 1.0 - p)
            bce = -jnp.maximum(jnp.log(sel), -100.0)
        else:
            # Matches PyTorch F.binary_cross_entropy (log clamped at -100).
            log_p = jnp.maximum(jnp.log(p), -100.0)
            log_1mp = jnp.maximum(jnp.log(1.0 - p), -100.0)
            bce = -(g * log_p + (1.0 - g) * log_1mp)

        # Lane-dense per-block partial (unmasked vst, np_ is a multiple of
        # 128); no cross-step accumulation -> grid axis can be "parallel".
        out_ref[...] = jnp.sum(wm * bce, axis=(0, 1)).reshape(1, 1, np_)

    return kernel


def graph_loss(pred_mtx_list, gt_mtx_list, *, binary_targets=False,
               gt_slab_dtype=jnp.bfloat16):
    """JAX/Pallas equivalent of GraphLoss.forward (single fused kernel)."""
    num_graphs = len(pred_mtx_list)
    assert num_graphs == len(gt_mtx_list)
    out_dtype = pred_mtx_list[0].dtype

    pdt = pred_mtx_list[0].dtype
    gdt = gt_mtx_list[0].dtype if gt_slab_dtype is None else gt_slab_dtype

    shapes = [tuple(g.shape) for g in gt_mtx_list]
    mp = _round_up(max(m for m, _ in shapes) + 1, 8)      # sublane-aligned
    np_ = _round_up(max(n for _, n in shapes) + 1, 128)   # lane-dense

    # --- VMEM-budgeted block size + explicit scoped-VMEM limit -------------
    try:
        vmem_cap = int(getattr(pltpu.get_tpu_info(), "vmem_capacity_bytes",
                               64 << 20))
    except Exception:  # no device / query unavailable -> conservative (v7x)
        vmem_cap = 64 << 20
    pred_bytes = jnp.dtype(pdt).itemsize
    gt_bytes = jnp.dtype(gdt).itemsize
    # Double-buffered streamed inputs + generous room for f32 temporaries.
    per_elem = 2 * (pred_bytes + gt_bytes) + 24
    budget = min(40 << 20, vmem_cap // 2)
    gb = max(1, min(num_graphs, budget // (per_elem * mp * np_)))
    num_blocks = -(-num_graphs // gb)
    g_pad = num_blocks * gb
    vmem_limit = int(min(vmem_cap,
                         max(per_elem * gb * mp * np_ + (4 << 20), 32 << 20)))
    # TODO(synk): if one padded graph alone exceeds VMEM (huge mp*np_), a
    # second lane-axis grid dimension would be needed; not implemented here.

    # --- Build lane-dense slabs (pred in native dtype, gt narrow) ----------
    def _pad(x, dt):
        return jnp.pad(x.astype(dt),
                       ((0, mp - x.shape[0]), (0, np_ - x.shape[1])))

    pred_slab = jnp.stack([_pad(p, pdt) for p in pred_mtx_list]
                          + [jnp.zeros((mp, np_), pdt)] * (g_pad - num_graphs))
    gt_slab = jnp.stack([_pad(g, gdt) for g in gt_mtx_list]
                        + [jnp.zeros((mp, np_), gdt)] * (g_pad - num_graphs))

    # Per-graph scalars (rows, cols, 1/(rows+cols)) — 12 B/graph instead of
    # a dense f32 mask slab.  Padded graphs get all-zeros -> contribute 0.
    rows = [m for m, _ in shapes] + [0] * (g_pad - num_graphs)
    cols = [n for _, n in shapes] + [0] * (g_pad - num_graphs)
    scale = ([1.0 / float(m + n) for m, n in shapes]
             + [0.0] * (g_pad - num_graphs))
    rows_arr = jnp.asarray(rows, jnp.int32).reshape(g_pad, 1, 1)
    cols_arr = jnp.asarray(cols, jnp.int32).reshape(g_pad, 1, 1)
    scale_arr = jnp.asarray(scale, jnp.float32).reshape(g_pad, 1, 1)

    total = g_pad * mp * np_
    cost = pl.CostEstimate(
        flops=10 * total,
        transcendentals=(1 if binary_targets else 2) * total,
        bytes_accessed=(total * (pred_bytes + gt_bytes)
                        + num_blocks * np_ * 4 + g_pad * 12),
    )

    blk = lambda s: (s, 0, 0)
    tiny = pl.BlockSpec((gb, 1, 1), blk)
    partials = pl.pallas_call(
        _make_bce_kernel(binary_targets),
        out_shape=jax.ShapeDtypeStruct((num_blocks, 1, np_), jnp.float32),
        grid=(num_blocks,),
        in_specs=[
            pl.BlockSpec((gb, mp, np_), blk),   # pred slab
            pl.BlockSpec((gb, mp, np_), blk),   # gt slab
            tiny, tiny, tiny,                   # per-graph rows/cols/scale
        ],
        out_specs=pl.BlockSpec((1, 1, np_), blk),
        compiler_params=pltpu.CompilerParams(
            dimension_semantics=("parallel",),
            vmem_limit_bytes=vmem_limit,
        ),
        cost_estimate=cost,
    )(pred_slab, gt_slab, rows_arr, cols_arr, scale_arr)

    # Tiny tree-sum of the lane-dense per-block partials.
    return jnp.sum(partials).reshape((1,)).astype(out_dtype)


def _graph_loss_ref(pred_mtx_list, gt_mtx_list):
    """Pure-JAX reference (mirrors the PyTorch module exactly)."""
    loss = jnp.zeros((1,), dtype=jnp.float32)
    for pred, gt in zip(pred_mtx_list, gt_mtx_list):
        tra_ns, det_ns = gt.shape
        p = pred[:-1, :-1].astype(jnp.float32)
        g = gt.astype(jnp.float32)
        log_p = jnp.maximum(jnp.log(p), -100.0)
        log_1mp = jnp.maximum(jnp.log(1.0 - p), -100.0)
        bce = -(g * log_p + (1.0 - g) * log_1mp)
        loss = loss + jnp.sum(bce) / (tra_ns + det_ns)
    return loss.astype(pred_mtx_list[0].dtype)


if __name__ == "__main__":
    key = jax.random.PRNGKey(0)
    k1, k2, k3, k4 = jax.random.split(key, 4)

    # Graph 1: gt (8, 16), pred (9, 17) — probabilities in (0, 1).
    gt1 = (jax.random.uniform(k1, (8, 16)) > 0.8).astype(jnp.float32)
    pred1 = jax.nn.sigmoid(jax.random.normal(k2, (9, 17))).astype(jnp.float32)

    # Graph 2: gt (16, 8), pred (17, 9).
    gt2 = (jax.random.uniform(k3, (16, 8)) > 0.8).astype(jnp.float32)
    pred2 = jax.nn.sigmoid(jax.random.normal(k4, (17, 9))).astype(jnp.float32)

    pred_list = [pred1, pred2]
    gt_list = [gt1, gt2]

    ref = _graph_loss_ref(pred_list, gt_list)

    # General (exact BCE semantics) path.
    out = graph_loss(pred_list, gt_list)
    jax.block_until_ready(out)
    assert out.shape == (1,)
    assert jnp.allclose(out, ref, rtol=1e-5, atol=1e-5), (out, ref)

    # Single-log path (valid here because the demo gt is strictly 0/1).
    out_bin = graph_loss(pred_list, gt_list, binary_targets=True)
    jax.block_until_ready(out_bin)
    assert jnp.allclose(out_bin, ref, rtol=1e-5, atol=1e-5), (out_bin, ref)

    print("KERNEL_OK")
</pallas_src>

<mosaic_0001>
module attributes {stable_mosaic.version = 11 : i64} {
  func.func @kernel(%arg0: i32, %arg1: memref<2x24x128xf32, #tpu.memory_space<vmem>>, %arg2: memref<2x24x128xbf16, #tpu.memory_space<vmem>>, %arg3: memref<2x1x1xi32, #tpu.memory_space<vmem>>, %arg4: memref<2x1x1xi32, #tpu.memory_space<vmem>>, %arg5: memref<2x1x1xf32, #tpu.memory_space<vmem>>, %arg6: memref<1x1x128xf32, #tpu.memory_space<vmem>>) attributes {dimension_semantics = [#tpu.dimension_semantics<parallel>], iteration_bounds = array<i64: 1>, scalar_prefetch = 0 : i64, scratch_operands = 0 : i64, tpu.core_type = #tpu.core_type<tc>, window_params = [{transform_indices = @transform_0, window_bounds = array<i64: 2, 24, 128>}, {transform_indices = @transform_1, window_bounds = array<i64: 2, 24, 128>}, {transform_indices = @transform_2, window_bounds = array<i64: 2, 1, 1>}, {transform_indices = @transform_3, window_bounds = array<i64: 2, 1, 1>}, {transform_indices = @transform_4, window_bounds = array<i64: 2, 1, 1>}, {transform_indices = @transform_5, window_bounds = array<i64: 1, 1, 128>}]} {
    %c0 = arith.constant 0 : index
    %c0_0 = arith.constant 0 : index
    %c0_1 = arith.constant 0 : index
    %0 = vector.load %arg1[%c0, %c0_0, %c0_1] : memref<2x24x128xf32, #tpu.memory_space<vmem>>, vector<2x24x128xf32>
    %c0_2 = arith.constant 0 : index
    %c0_3 = arith.constant 0 : index
    %c0_4 = arith.constant 0 : index
    %1 = vector.load %arg2[%c0_2, %c0_3, %c0_4] : memref<2x24x128xbf16, #tpu.memory_space<vmem>>, vector<2x24x128xbf16>
    %2 = arith.extf %1 : vector<2x24x128xbf16> to vector<2x24x128xf32>
    %3 = tpu.iota {dimensions = array<i32: 1>} : vector<2x24x128xi32>
    %4 = tpu.iota {dimensions = array<i32: 2>} : vector<2x24x128xi32>
    %c0_5 = arith.constant 0 : index
    %c0_6 = arith.constant 0 : index
    %c0_7 = arith.constant 0 : index
    %5 = vector.load %arg3[%c0_5, %c0_6, %c0_7] : memref<2x1x1xi32, #tpu.memory_space<vmem>>, vector<2x1x1xi32>
    %6 = vector.broadcast %5 : vector<2x1x1xi32> to vector<2x24x128xi32>
    %7 = arith.cmpi slt, %3, %6 : vector<2x24x128xi32>
    %c0_8 = arith.constant 0 : index
    %c0_9 = arith.constant 0 : index
    %c0_10 = arith.constant 0 : index
    %8 = vector.load %arg4[%c0_8, %c0_9, %c0_10] : memref<2x1x1xi32, #tpu.memory_space<vmem>>, vector<2x1x1xi32>
    %9 = vector.broadcast %8 : vector<2x1x1xi32> to vector<2x24x128xi32>
    %10 = arith.cmpi slt, %4, %9 : vector<2x24x128xi32>
    %11 = arith.andi %7, %10 : vector<2x24x128xi1>
    %c0_11 = arith.constant 0 : index
    %c0_12 = arith.constant 0 : index
    %c0_13 = arith.constant 0 : index
    %12 = vector.load %arg5[%c0_11, %c0_12, %c0_13] : memref<2x1x1xf32, #tpu.memory_space<vmem>>, vector<2x1x1xf32>
    %cst = arith.constant 0.000000e+00 : f32
    %13 = vector.shape_cast %12 : vector<2x1x1xf32> to vector<2x1x1xf32>
    %14 = vector.broadcast %13 : vector<2x1x1xf32> to vector<2x24x128xf32>
    %15 = vector.broadcast %cst : f32 to vector<2x24x128xf32>
    %16 = arith.select %11, %14, %15 : vector<2x24x128xi1>, vector<2x24x128xf32>
    %17 = math.log %0 : vector<2x24x128xf32>
    %cst_14 = arith.constant -1.000000e+02 : f32
    %18 = vector.broadcast %cst_14 : f32 to vector<2x24x128xf32>
    %19 = arith.maximumf %17, %18 : vector<2x24x128xf32>
    %cst_15 = arith.constant 1.000000e+00 : f32
    %20 = vector.broadcast %cst_15 : f32 to vector<2x24x128xf32>
    %21 = arith.subf %20, %0 : vector<2x24x128xf32>
    %22 = math.log %21 : vector<2x24x128xf32>
    %cst_16 = arith.constant -1.000000e+02 : f32
    %23 = vector.broadcast %cst_16 : f32 to vector<2x24x128xf32>
    %24 = arith.maximumf %22, %23 : vector<2x24x128xf32>
    %25 = arith.mulf %2, %19 : vector<2x24x128xf32>
    %cst_17 = arith.constant 1.000000e+00 : f32
    %26 = vector.broadcast %cst_17 : f32 to vector<2x24x128xf32>
    %27 = arith.subf %26, %2 : vector<2x24x128xf32>
    %28 = arith.mulf %27, %24 : vector<2x24x128xf32>
    %29 = arith.addf %25, %28 : vector<2x24x128xf32>
    %cst_18 = arith.constant 0.000000e+00 : f32
    %30 = vector.broadcast %cst_18 : f32 to vector<2x24x128xf32>
    %31 = arith.subf %30, %29 : vector<2x24x128xf32>
    %32 = arith.mulf %16, %31 : vector<2x24x128xf32>
    %cst_19 = arith.constant dense<0.000000e+00> : vector<128xf32>
    %33 = vector.multi_reduction <add>, %32, %cst_19 [0, 1] : vector<2x24x128xf32> to vector<128xf32>
    %34 = vector.shape_cast %33 : vector<128xf32> to vector<1x1x128xf32>
    %c0_20 = arith.constant 0 : index
    %c0_21 = arith.constant 0 : index
    %c0_22 = arith.constant 0 : index
    %35 = vector.load %arg6[%c0_20, %c0_21, %c0_22] : memref<1x1x128xf32, #tpu.memory_space<vmem>>, vector<1x1x128xf32>
    tpu.vector_store %arg6[%c0_20, %c0_21, %c0_22], %34 {strides = array<i32>} : memref<1x1x128xf32, #tpu.memory_space<vmem>>, vector<1x1x128xf32>,
    return
  }
  func.func @transform_0(%arg0: i32) -> (i32, i32, i32) {
    %c0_i32 = arith.constant 0 : i32
    %c0_i32_0 = arith.constant 0 : i32
    %c0_i32_1 = arith.constant 0 : i32
    return %arg0, %c0_i32, %c0_i32_0 : i32, i32, i32
  }
  func.func @transform_1(%arg0: i32) -> (i32, i32, i32) {
    %c0_i32 = arith.constant 0 : i32
    %c0_i32_0 = arith.constant 0 : i32
    %c0_i32_1 = arith.constant 0 : i32
    return %arg0, %c0_i32, %c0_i32_0 : i32, i32, i32
  }
  func.func @transform_2(%arg0: i32) -> (i32, i32, i32) {
    %c0_i32 = arith.constant 0 : i32
    %c0_i32_0 = arith.constant 0 : i32
    %c0_i32_1 = arith.constant 0 : i32
    return %arg0, %c0_i32, %c0_i32_0 : i32, i32, i32
  }
  func.func @transform_3(%arg0: i32) -> (i32, i32, i32) {
    %c0_i32 = arith.constant 0 : i32
    %c0_i32_0 = arith.constant 0 : i32
    %c0_i32_1 = arith.constant 0 : i32
    return %arg0, %c0_i32, %c0_i32_0 : i32, i32, i32
  }
  func.func @transform_4(%arg0: i32) -> (i32, i32, i32) {
    %c0_i32 = arith.constant 0 : i32
    %c0_i32_0 = arith.constant 0 : i32
    %c0_i32_1 = arith.constant 0 : i32
    return %arg0, %c0_i32, %c0_i32_0 : i32, i32, i32
  }
  func.func @transform_5(%arg0: i32) -> (i32, i32, i32) {
    %c0_i32 = arith.constant 0 : i32
    %c0_i32_0 = arith.constant 0 : i32
    %c0_i32_1 = arith.constant 0 : i32
    return %arg0, %c0_i32, %c0_i32_0 : i32, i32, i32
  }
}

</mosaic_0001>

<bundles_post_ra>
// kernel: tpu_custom_call.1
= control target key start
LH: loop header
LB: loop body
LE: loop exit
PB: predicated region body
PF: predicated region fallthrough
CT: control target
= control target key end

     0   :  { %10 = vsyncpa [#allocation3], 0  ;;  %s469_s0 = inlined_call_operand.hbm [shape: f32[2,24,128], index: 0, kind: input, shape index: {}]   ;;  %s470_s1 = inlined_call_operand.hbm [shape: bf16[2,24,128], index: 1, kind: input, shape index: {}]   ;;  %s471_s2 = inlined_call_operand.vmem [shape: s32[2,1,1], index: 2, kind: input, shape index: {}]   ;;  %s472_s3 = inlined_call_operand.vmem [shape: s32[2,1,1], index: 3, kind: input, shape index: {}]   ;;  %s473_s4 = inlined_call_operand.vmem [shape: f32[2,1,1], index: 4, kind: input, shape index: {}]   ;;  %s474_s5 = inlined_call_operand.hbm [shape: f32[1,1,128], index: 5, kind: output, shape index: {}]  }
   0x1   :  { %11 = vsyncpa [#allocation6], 0 }
   0x2   :  { %12 = vsyncpa [#allocation4], 0  ;;  %s377_s18 = smov [#allocation2]   ;;  %s305_s22 = scalar_lea.hbm %s469_s0, 768 }
   0x3   :  { %s18_s19 = sshll.u32 %s377_s18, 4  ;;  %p306_p0 = scmp.ne.s32.totalorder %s469_s0, %s305_s22  ;;  %s19_s19 = int_to_ptr.vmem [resolvable:$true] %s18_s19 }
   0x4   :  { %p309_p1 = scmp.lt.u32.totalorder %s305_s22, %s469_s0 }
   0x6   :  { %p311_p2 = pnand %p309_p1, %p306_p0 }
   0x8   :  { %314 = shalt.err (!%p311_p2)
}
   0x9   :  { %s315_s27 = scalar_lea.vmem %s19_s19, 768  ;;  %p320_p4 = scmp.lt.s32.totalorder %s19_s19, %s19_s19 }
   0xa   :  { %p316_p3 = scmp.ne.s32.totalorder %s19_s19, %s315_s27  ;;  %p321_p5 = scmp.lt.s32.totalorder %s315_s27, %s315_s27 }
   0xc   :  { %p322_p6 = por %p321_p5, %p320_p4 }
   0xe   :  { %p323_p7 = pnand %p322_p6, %p316_p3 }
  0x10   :  { %326 = shalt.err (!%p323_p7)
}
  0x11   :  { %s378_s28 = smov 128   ;;  %s379_s29 = smov 8  }
  0x12   :  { %24 = dma.hbm_to_vmem [thread:$0]  %s469_s0, 768, %s19_s19, [#allocation3], %s378_s28, %s378_s28, %s379_s29  }
  0x13   :  { %s380_s7 = smov [#allocation5]   ;;  %s327_s11 = scalar_lea.hbm %s470_s1, 384 }
  0x14   :  { %s30_s8 = sshll.u32 %s380_s7, 4  ;;  %p328_p8 = scmp.ne.s32.totalorder %s470_s1, %s327_s11  ;;  %s31_s8 = int_to_ptr.vmem [resolvable:$true] %s30_s8 }
  0x15   :  { %p331_p9 = scmp.lt.u32.totalorder %s327_s11, %s470_s1 }
  0x17   :  { %p333_p10 = pnand %p331_p9, %p328_p8 }
  0x19   :  { %336 = shalt.err (!%p333_p10)
}
  0x1a   :  { %s337_s16 = scalar_lea.vmem %s31_s8, 384  ;;  %p342_p12 = scmp.lt.s32.totalorder %s31_s8, %s31_s8 }
  0x1b   :  { %p338_p11 = scmp.ne.s32.totalorder %s31_s8, %s337_s16  ;;  %p343_p13 = scmp.lt.s32.totalorder %s337_s16, %s337_s16 }
  0x1d   :  { %p344_p0 = por %p343_p13, %p342_p12 }
  0x1f   :  { %p345_p1 = pnand %p344_p0, %p338_p11 }
  0x21   :  { %348 = shalt.err (!%p345_p1)
}
  0x22   :  { %s381_s0 = smov 64   ;;  %s382_s17 = smov 4  }
  0x23   :  { %36 = dma.hbm_to_vmem [thread:$0]  %s470_s1, 384, %s31_s8, [#allocation6], %s381_s0, %s381_s0, %s382_s17  }
  0x24   :  { %371 = dma.done.wait [#allocation3], 768  }
  0x25   :  { %372 = vsyncadd [#allocation3], 4294966528 }
  0x26   :  { %373 = dma.done.wait [#allocation6], 384  }
  0x27   :  { %374 = vsyncadd [#allocation6], 4294966912  ;;  %v383_v0 = vmov 0   ;;  %v255_v1 = vld [vmem:[%s473_s4] ss:$0 sm:$0xff]  ;;  %v50_v8 = vld [vmem:[#allocation2 + $0x8] sm:$0xff]  ;;  %v67_v46 = vlaneseq }
  0x28   :  { %280 = vset.pattern.permute.xlu1 %v383_v0  ;;  %279 = vset.pattern.permute.xlu0 %v383_v0  ;;  %v251_v2 = vld [vmem:[%s471_s2] ss:$0 sm:$0xff]  ;;  %v252_v3 = vld [vmem:[%s471_s2 + $0x1] ss:$0 sm:$0xff]  ;;  %v51_v9 = vld [vmem:[#allocation2 + $0x10] sm:$0xff]  ;;  %v164_v11 = vsub.f32 1.0, %v50_v8 }
  0x29   :  { %132 = vperm.xlu1 %280, %v255_v1   ;;  %84 = vperm.xlu0 %279, %v251_v2   ;;  %v253_v4 = vld [vmem:[%s472_s3] ss:$0 sm:$0xff]  ;;  %v256_v5 = vld [vmem:[%s473_s4 + $0x1] ss:$0 sm:$0xff]  ;;  %v52_v12 = vld [vmem:[#allocation2 + $0x18] sm:$0xff]  ;;  %v165_v13 = vsub.f32 1.0, %v51_v9 }
  0x2a   :  { %v254_v6 = vld [vmem:[%s472_s3 + $0x1] ss:$0 sm:$0xff]  ;;  %v166_v15 = vsub.f32 1.0, %v52_v12  ;;  %v54_v16 = vld [vmem:[#allocation2 + $0x28] sm:$0xff]  ;;  %v258_v21 = vld [vmem:[#allocation5] sm:$0xff]   ;;  %s384_s2 = smov [#allocation7]  }
  0x2b   :  { %v49_v7 = vld [vmem:[#allocation2] sm:$0xff]  ;;  %v168_v18 = vsub.f32 1.0, %v54_v16  ;;  %v259_v25 = vunpack.c.l.bf16 %v258_v21  ;;  %v269_v26 = vld [vmem:[#allocation5 + $0x8] sm:$0xff]   ;;  %v260_v32 = vunpack.c.h.bf16 %v258_v21  ;;  %s241_s3 = sshll.u32 %s384_s2, 4  ;;  %s242_s3 = int_to_ptr.vmem [resolvable:$true] %s241_s3 }
  0x2c   :  { %v163_v10 = vsub.f32 1.0, %v49_v7  ;;  %281 = vlog2.f32 %v49_v7  ;;  %v53_v14 = vld [vmem:[#allocation2 + $0x20] sm:$0xff]  ;;  %v263_v33 = vunpack.c.l.bf16 %v269_v26  ;;  %v264_v39 = vunpack.c.h.bf16 %v269_v26  ;;  %s349_s4 = scalar_lea.vmem %s242_s3, 16  ;;  %s353_s6 = scalar_lea.vmem %s242_s3, 32 }
  0x2d   :  { %87 = vperm.xlu1 %280, %v252_v3   ;;  %106 = vperm.xlu0 %279, %v253_v4   ;;  %283 = vlog2.f32 %v50_v8  ;;  %v167_v17 = vsub.f32 1.0, %v53_v14  ;;  %v270_v36 = vld [vmem:[#allocation5 + $0x10] sm:$0xff]   ;;  %v193_v38 = vsub.f32 1.0, %v259_v25  ;;  %v194_v53 = vsub.f32 1.0, %v260_v32  ;;  %p350_p2 = scmp.ne.s32.totalorder %s242_s3, %s349_s4  ;;  %p354_p3 = scmp.lt.s32.totalorder %s242_s3, %s242_s3 }
  0x2e   :  { %285 = vlog2.f32 %v163_v10  ;;  %v267_v47 = vunpack.c.l.bf16 %v270_v36  ;;  %v195_v54 = vsub.f32 1.0, %v263_v33  ;;  %v268_v55 = vunpack.c.h.bf16 %v270_v36  ;;  %p355_p4 = scmp.lt.s32.totalorder %s353_s6, %s349_s4 }
  0x2f   :  { %287 = vlog2.f32 %v51_v9  ;;  %v196_v58 = vsub.f32 1.0, %v264_v39 }
  0x30   :  { %289 = vlog2.f32 %v164_v11  ;;  %v197_v8 = vsub.f32 1.0, %v267_v47  ;;  %p356_p5 = por %p355_p4, %p354_p3 }
  0x31   :  { %136 = vperm.xlu1 %280, %v256_v5   ;;  %109 = vperm.xlu0 %279, %v254_v6   ;;  %291 = vlog2.f32 %v165_v13  ;;  %v68_v5 = vshrl.u32 %v67_v46, 7 }
  0x32   :  { %293 = vlog2.f32 %v52_v12  ;;  %v198_v12 = vsub.f32 1.0, %v268_v55  ;;  %p357_p6 = pnand %p356_p5, %p350_p2 }
  0x33   :  { %295 = vlog2.f32 %v166_v15  ;;  %v69_v21 = vadd.s32 8, %v68_v5 }
  0x34   :  { %297 = vlog2.f32 %v53_v14 }
  0x35   :  { %299 = vlog2.f32 %v167_v17 }
  0x36   :  { %v282_v19 = vpop.eup %281  ;;  %301 = vlog2.f32 %v54_v16 }
  0x37   :  { %v284_v20 = vpop.eup %283  ;;  %303 = vlog2.f32 %v168_v18  ;;  %v146_v28 = vmul.f32 0.6931472, %v282_v19  ;;  %v72_v19 = vand.u32 127, %v67_v46 }
  0x38   :  { %v286_v22 = vpop.eup %285  ;;  %v148_v34 = vmul.f32 0.6931472, %v284_v20 }
  0x39   :  { %v288_v23 = vpop.eup %287  ;;  %v170_v29 = vmul.f32 0.6931472, %v286_v22  ;;  %v157_v42 = vmax.f32 %v146_v28, -100.0 }
  0x3a   :  { %v290_v24 = vpop.eup %289  ;;  %v150_v41 = vmul.f32 0.6931472, %v288_v23  ;;  %v158_v51 = vmax.f32 %v148_v34, -100.0 }
  0x3b   :  { %v292_v27 = vpop.eup %291  ;;  %v172_v35 = vmul.f32 0.6931472, %v290_v24  ;;  %v181_v44 = vmax.f32 %v170_v29, -100.0  ;;  %v187_v61 = vmul.f32 %v259_v25, %v157_v42  ;;  %v70_v24 = vadd.s32 16, %v68_v5 }
  0x3c   :  { %v294_v30 = vpop.eup %293  ;;  %v174_v43 = vmul.f32 0.6931472, %v292_v27  ;;  %v159_v59 = vmax.f32 %v150_v41, -100.0  ;;  %v188_v3 = vmul.f32 %v260_v32, %v158_v51 }
  0x3d   :  { %v296_v31 = vpop.eup %295  ;;  %v152_v48 = vmul.f32 0.6931472, %v294_v30  ;;  %v182_v52 = vmax.f32 %v172_v35, -100.0  ;;  %v199_v62 = vmul.f32 %v193_v38, %v181_v44 }
  0x3e   :  { %v298_v37 = vpop.eup %297  ;;  %v176_v49 = vmul.f32 0.6931472, %v296_v31  ;;  %v183_v60 = vmax.f32 %v174_v43, -100.0  ;;  %v189_v9 = vmul.f32 %v263_v33, %v159_v59 }
  0x3f   :  { %v300_v40 = vpop.eup %299  ;;  %v154_v56 = vmul.f32 0.6931472, %v298_v37  ;;  %v160_v0 = vmax.f32 %v152_v48, -100.0  ;;  %v200_v4 = vmul.f32 %v194_v53, %v182_v52  ;;  %v205_v11 = vadd.f32 %v199_v62, %v187_v61 }
  0x40   :  { %v302_v45 = vpop.eup %301  ;;  %v178_v57 = vmul.f32 0.6931472, %v300_v40  ;;  %v184_v2 = vmax.f32 %v176_v49, -100.0  ;;  %v201_v10 = vmul.f32 %v195_v54, %v183_v60 }
  0x41   :  { %v304_v50 = vpop.eup %303  ;;  %v156_v63 = vmul.f32 0.6931472, %v302_v45  ;;  %v161_v6 = vmax.f32 %v154_v56, -100.0  ;;  %v190_v17 = vmul.f32 %v264_v39, %v160_v0  ;;  %v206_v20 = vadd.f32 %v200_v4, %v188_v3 }
  0x42   :  { %v180_v1 = vmul.f32 0.6931472, %v304_v50  ;;  %v185_v7 = vmax.f32 %v178_v57, -100.0  ;;  %v202_v18 = vmul.f32 %v196_v58, %v184_v2  ;;  %v207_v25 = vadd.f32 %v201_v10, %v189_v9 }
  0x43   :  { %v162_v15 = vmax.f32 %v156_v63, -100.0  ;;  %v191_v22 = vmul.f32 %v267_v47, %v161_v6  ;;  %v211_v28 = vsub.f32 0.0, %v205_v11  ;;  %v212_v32 = vsub.f32 0.0, %v206_v20 }
  0x44   :  { %v186_v16 = vmax.f32 %v180_v1, -100.0  ;;  %v203_v23 = vmul.f32 %v197_v8, %v185_v7  ;;  %v208_v31 = vadd.f32 %v202_v18, %v190_v17  ;;  %v213_v35 = vsub.f32 0.0, %v207_v25 }
  0x45   :  { %v192_v29 = vmul.f32 %v268_v55, %v162_v15 }
  0x46   :  { %v204_v30 = vmul.f32 %v198_v12, %v186_v16  ;;  %v209_v33 = vadd.f32 %v203_v23, %v191_v22  ;;  %v214_v40 = vsub.f32 0.0, %v208_v31 }
  0x48   :  { %v210_v39 = vadd.f32 %v204_v30, %v192_v29  ;;  %v215_v44 = vsub.f32 0.0, %v209_v33 }
  0x4a   :  { %v216_v51 = vsub.f32 0.0, %v210_v39 }
  0xa8   :  { %v133_v13 = vpop.permute.xlu1 %132  ;;  %v85_v14 = vpop.permute.xlu0 %84 }
  0xa9   :  { %vm89_vm0 = vcmp.lt.s32.totalorder %v68_v5, %v85_v14  ;;  %vm90_vm2 = vcmp.lt.s32.totalorder %v69_v21, %v85_v14  ;;  %vm91_vm4 = vcmp.lt.s32.totalorder %v70_v24, %v85_v14 }
  0xac   :  { %v88_v26 = vpop.permute.xlu1 %87  ;;  %v107_v27 = vpop.permute.xlu0 %106 }
  0xad   :  { %vm111_vm1 = vcmp.lt.s32.totalorder %v72_v19, %v107_v27  ;;  %vm92_vm7 = vcmp.lt.s32.totalorder %v68_v5, %v88_v26  ;;  %vm93_vm9 = vcmp.lt.s32.totalorder %v69_v21, %v88_v26  ;;  %vm94_vm11 = vcmp.lt.s32.totalorder %v70_v24, %v88_v26 }
  0xae   :  { %vm113_vm3 = vmand %vm89_vm0, %vm111_vm1 }
  0xaf   :  { %vm114_vm5 = vmand %vm90_vm2, %vm111_vm1  ;;  %v139_v34 = vsel %vm113_vm3, %v133_v13, 0.0 }
  0xb0   :  { %vm115_vm6 = vmand %vm91_vm4, %vm111_vm1  ;;  %v140_v36 = vsel %vm114_vm5, %v133_v13, 0.0  ;;  %v217_v37 = vmul.f32 %v211_v28, %v139_v34  ;;  %v110_v38 = vpop.permute.xlu0 %109  ;;  %v137_v43 = vpop.permute.xlu1 %136 }
  0xb1   :  { %v141_v41 = vsel %vm115_vm6, %v133_v13, 0.0  ;;  %v218_v42 = vmul.f32 %v212_v32, %v140_v36  ;;  %vm112_vm8 = vcmp.lt.s32.totalorder %v72_v19, %v110_v38 }
  0xb2   :  { %vm116_vm10 = vmand %vm92_vm7, %vm112_vm8  ;;  %v219_v45 = vmul.f32 %v213_v35, %v141_v41 }
  0xb3   :  { %v223_v46 = vadd.f32 %v218_v42, %v217_v37  ;;  %vm117_vm12 = vmand %vm93_vm9, %vm112_vm8  ;;  %v142_v47 = vsel %vm116_vm10, %v137_v43, 0.0 }
  0xb4   :  { %vm118_vm13 = vmand %vm94_vm11, %vm112_vm8  ;;  %v143_v48 = vsel %vm117_vm12, %v137_v43, 0.0  ;;  %v220_v49 = vmul.f32 %v214_v40, %v142_v47 }
  0xb5   :  { %v224_v50 = vadd.f32 %v223_v46, %v219_v45  ;;  %v144_v52 = vsel %vm118_vm13, %v137_v43, 0.0  ;;  %v221_v53 = vmul.f32 %v215_v44, %v143_v48 }
  0xb6   :  { %v222_v55 = vmul.f32 %v216_v51, %v144_v52 }
  0xb7   :  { %v225_v54 = vadd.f32 %v224_v50, %v220_v49 }
  0xb9   :  { %v226_v56 = vadd.f32 %v225_v54, %v221_v53 }
  0xbb   :  { %v227_v57 = vadd.f32 %v226_v56, %v222_v55 }
  0xbd   :  { %v228_v58 = vrot.slane %v227_v57, 4 }
  0xbf   :  { %v229_v59 = vadd.f32 %v228_v58, %v227_v57 }
  0xc1   :  { %v230_v60 = vrot.slane %v229_v59, 2 }
  0xc3   :  { %v231_v61 = vadd.f32 %v230_v60, %v229_v59 }
  0xc5   :  { %v232_v62 = vrot.slane %v231_v61, 1 }
  0xc7   :  { %v233_v63 = vadd.f32 %v232_v62, %v231_v61 }
  0xc9   :  { %234 = vst [vmem:[#allocation7] sm:$0x1] %v233_v63 }
  0xca   :  { %360 = shalt.err (!%p357_p6)
}
  0xcb   :  { %s361_s9 = scalar_lea.hbm %s474_s5, 16 }
  0xcc   :  { %p362_p7 = scmp.ne.s32.totalorder %s474_s5, %s361_s9  ;;  %p365_p8 = scmp.lt.u32.totalorder %s361_s9, %s474_s5 }
  0xce   :  { %p367_p9 = pnand %p365_p8, %p362_p7 }
  0xd0   :  { %370 = shalt.err (!%p367_p9)
}
  0xd1   :  { %244 = dma.vmem_to_hbm [thread:$0]  %s242_s3, 16, %s474_s5, [#allocation4]  }
  0xd2   :  { %375 = dma.done.wait [#allocation4], 16  }
  0xd3   :  { %376 = vsyncadd [#allocation4], 4294967280 }
  0xd4   :  { %248 = vsyncpa [#allocation3], 1 }
  0xd5   :  { %249 = vsyncpa [#allocation6], 1 }
  0xd6   :  { %250 = vsyncpa [#allocation4], 1 }

</bundles_post_ra>
